<compile_context>
chip_gen: v6e
topology: v6e:2x2x1
jax: 0.10.0
libtpu: 0.0.40
codegen_flags: <defaults>
</compile_context>

<pallas_src>
import functools

import jax
import jax.numpy as jnp
from jax.experimental import pallas as pl
from jax.experimental.pallas import tpu as pltpu


def _round_up(x, m):
    return ((x + m - 1) // m) * m


def statnet_kernel(h_ref, w0_ref, w1_ref, w2_ref, wp_ref,
                   sp_ref,     # (6, hidden): rows [g0, be0, g1, be1, g2, be2]
                   pp_ref,     # (3, c2_pad): rows [bias_p, gamma_p, beta_p]
                   out_ref,    # (batch, c2_pad) = [mean | logvar | zero-pad]
                   e_scr,      # (n_pad, hidden) f32: resident raw PrePool activation
                   sum_scr,    # (1, hidden) f32: PrePool BN sum accumulator
                   ssq_scr,    # (1, hidden) f32: PrePool BN sum-of-squares accumulator
                   *, batch_size, sample_size, n_real, two_c):
    f32 = jnp.float32
    i = pl.program_id(0)
    tm = h_ref.shape[0]

    def mm(x, w):
        # bf16 (or f32) operands, f32 accumulation on the MXU.
        return jnp.dot(x.astype(w.dtype), w, preferred_element_type=f32)

    def bn_relu(x, gamma, beta, eps):
        # Training-mode BatchNorm1d (biased variance), single reduction pass.
        # The preceding linear bias cancels exactly under this BN and was dropped.
        inv_n = 1.0 / x.shape[0]
        mu = jnp.sum(x, axis=0, keepdims=True) * inv_n
        var = jnp.maximum(jnp.sum(x * x, axis=0, keepdims=True) * inv_n - mu * mu, 0.0)
        return jnp.maximum((x - mu) * jax.lax.rsqrt(var + eps) * gamma + beta, 0.0)

    # ---- PrePool linear on this row tile; accumulate BN statistics ----
    @pl.when(i == 0)
    def _():
        sum_scr[...] = jnp.zeros_like(sum_scr)
        ssq_scr[...] = jnp.zeros_like(ssq_scr)

    a = mm(h_ref[...], w0_ref[...])                       # (TM, hidden) f32
    off = pl.multiple_of(i * tm, tm)
    e_scr[pl.ds(off, tm), :] = a
    sum_scr[...] += jnp.sum(a, axis=0, keepdims=True)
    ssq_scr[...] += jnp.sum(a * a, axis=0, keepdims=True)

    # ---- Epilogue on the last tile: normalize + ReLU + pool + PostPool ----
    @pl.when(i == pl.num_programs(0) - 1)
    def _():
        sp = sp_ref[...]                                  # (6, hidden) f32
        pp = pp_ref[...]                                  # (3, c2_pad) f32

        inv_n = 1.0 / n_real                              # padded rows are exact zeros
        mu = sum_scr[...] * inv_n
        var = jnp.maximum(ssq_scr[...] * inv_n - mu * mu, 0.0)
        e = e_scr[pl.ds(0, n_real), :]                    # (n_real, hidden)
        e = jnp.maximum((e - mu) * jax.lax.rsqrt(var + 1e-5) * sp[0:1] + sp[1:2], 0.0)

        # Pool: mean over contiguous sample groups (single sublane reduction).
        # (Production: keep sample_size a multiple of 8 for a pure sublane view.)
        pooled = jnp.mean(e.reshape(batch_size, sample_size, e.shape[-1]), axis=1)

        # PostPool: two (fc -> bn -> relu) blocks; bias-free (cancels under BN).
        e = bn_relu(mm(pooled, w1_ref[...]), sp[2:3], sp[3:4], 1e-5)
        e = bn_relu(mm(e, w2_ref[...]), sp[4:5], sp[5:6], 1e-5)

        # fc_params (bias kept) -> BatchNorm1d(1, eps=1e-3): stats over ALL elements.
        # Padded output columns have zero weights & zero bias, so they contribute 0 to
        # the sums; the divisor uses the real batch*2*c_dim element count.
        e = mm(e, wp_ref[...]) + pp[0:1]
        inv_m = 1.0 / (batch_size * two_c)
        mu_p = jnp.sum(e) * inv_m
        var_p = jnp.maximum(jnp.sum(e * e) * inv_m - mu_p * mu_p, 0.0)
        out_ref[...] = ((e - mu_p) * jax.lax.rsqrt(var_p + 1e-3)
                        * pp[1:2] + pp[2:3]).astype(out_ref.dtype)


def statistic_network(h, params, *, batch_size, sample_size, c_dim,
                      matmul_dtype=jnp.bfloat16, row_tile=256):
    n_rows, n_features = h.shape
    assert n_rows == batch_size * sample_size, \
        "h rows must be batch_size*sample_size contiguous per-batch groups"
    hidden = params["w0"].shape[1]
    two_c = 2 * c_dim
    c2_pad = _round_up(two_c, 128)      # lane-dense output store; sliced in wrapper

    # Row tile for the PrePool stage (multiple of 8 sublanes).
    tm = _round_up(min(row_tile, _round_up(n_rows, 8)), 8)
    n_pad = _round_up(n_rows, tm)
    num_tiles = n_pad // tm
    if n_pad != n_rows:
        # Padded rows are zero -> zero PrePool matmul rows -> no effect on BN sums.
        h = jnp.pad(h, ((0, n_pad - n_rows), (0, 0)))

    # Packed per-stage BN affine params (linear biases b0/b1/b2 dropped: they cancel).
    sp = jnp.concatenate([params["g0"], params["be0"],
                          params["g1"], params["be1"],
                          params["g2"], params["be2"]], axis=0).astype(jnp.float32)
    bp = jnp.pad(params["bp"].astype(jnp.float32), ((0, 0), (0, c2_pad - two_c)))
    pp = jnp.concatenate(
        [bp,
         jnp.full((1, c2_pad), params["gp"], jnp.float32),
         jnp.full((1, c2_pad), params["bep"], jnp.float32)], axis=0)

    # Matmul operands (bf16 by default; f32 accumulation in-kernel).  h is passed
    # through unchanged and cast per tile inside the kernel.
    w0 = params["w0"].astype(matmul_dtype)
    w1 = params["w1"].astype(matmul_dtype)
    w2 = params["w2"].astype(matmul_dtype)
    wp = jnp.pad(params["wp"], ((0, 0), (0, c2_pad - two_c))).astype(matmul_dtype)

    # --- generation-aware VMEM budget + cost estimate ---
    w_itemsize = jnp.dtype(matmul_dtype).itemsize
    weight_bytes = (n_features * hidden + 2 * hidden * hidden
                    + hidden * c2_pad) * w_itemsize
    needed = (2 * tm * n_features * h.dtype.itemsize      # double-buffered h tiles
              + weight_bytes
              + (6 * hidden + 3 * c2_pad) * 4             # packed param slabs
              + n_pad * hidden * 4 + 2 * hidden * 4       # resident activation + stats
              + 2 * batch_size * c2_pad * 4)              # output
    try:
        vmem_cap = pltpu.get_tpu_info().vmem_capacity_bytes  # 64 MiB v7x, 128 MiB v5e/v6e
    except Exception:
        vmem_cap = 128 * 1024 * 1024
    vmem_limit = int(min(0.75 * vmem_cap, max(needed + (8 << 20), 32 << 20)))

    flops = (2 * n_pad * n_features * hidden
             + 2 * 2 * batch_size * hidden * hidden
             + 2 * batch_size * hidden * c2_pad)
    bytes_accessed = (n_pad * n_features * h.dtype.itemsize + weight_bytes
                      + batch_size * c2_pad * 4)
    cost = pl.CostEstimate(flops=flops, transcendentals=4 * hidden + 2,
                           bytes_accessed=bytes_accessed)

    kernel = functools.partial(statnet_kernel, batch_size=batch_size,
                               sample_size=sample_size, n_real=n_rows, two_c=two_c)
    const = lambda i: (0, 0)

    out = pl.pallas_call(
        kernel,
        out_shape=jax.ShapeDtypeStruct((batch_size, c2_pad), jnp.float32),
        grid_spec=pltpu.PrefetchScalarGridSpec(
            num_scalar_prefetch=0,
            grid=(num_tiles,),
            in_specs=[
                # h row tiles: HBM->VMEM DMA double-buffered under the MXU matmul.
                # (pipeline_mode=pl.Buffered(3) is an option if DMA stays exposed at
                #  small n_features.)
                pl.BlockSpec((tm, n_features), lambda i: (i, 0)),
                pl.BlockSpec((n_features, hidden), const),   # w0, DMA'd once, resident
                pl.BlockSpec((hidden, hidden), const),       # w1
                pl.BlockSpec((hidden, hidden), const),       # w2
                pl.BlockSpec((hidden, c2_pad), const),       # wp (lane-padded)
                pl.BlockSpec((6, hidden), const),            # packed BN gammas/betas
                pl.BlockSpec((3, c2_pad), const),            # packed final-stage params
            ],
            out_specs=pl.BlockSpec((batch_size, c2_pad), const),
            scratch_shapes=[
                pltpu.VMEM((n_pad, hidden), jnp.float32),    # resident PrePool act.
                pltpu.VMEM((1, hidden), jnp.float32),        # BN sum
                pltpu.VMEM((1, hidden), jnp.float32),        # BN sum of squares
            ]),
        compiler_params=pltpu.CompilerParams(
            dimension_semantics=("arbitrary",),              # reduction-carrying axis
            vmem_limit_bytes=vmem_limit),
        cost_estimate=cost,
    )(h, w0, w1, w2, wp, sp, pp)

    # Lane-dense padded output from the kernel; slice (mean, logvar) here.
    return out[:, :c_dim], out[:, c_dim:two_c]


def make_params(key, n_features, hidden_dim, c_dim):
    ks = jax.random.split(key, 4)

    def lin(k, fan_in, fan_out):
        bound = 1.0 / jnp.sqrt(fan_in)
        kw, kb = jax.random.split(k)
        w = jax.random.uniform(kw, (fan_in, fan_out), jnp.float32, -bound, bound)
        b = jax.random.uniform(kb, (1, fan_out), jnp.float32, -bound, bound)
        return w, b

    p = {}
    p["w0"], p["b0"] = lin(ks[0], n_features, hidden_dim)
    p["w1"], p["b1"] = lin(ks[1], hidden_dim, hidden_dim)
    p["w2"], p["b2"] = lin(ks[2], hidden_dim, hidden_dim)
    p["wp"], p["bp"] = lin(ks[3], hidden_dim, 2 * c_dim)
    # BatchNorm affine params: PyTorch default init (gamma=1, beta=0).
    for name in ("0", "1", "2"):
        p["g" + name] = jnp.ones((1, hidden_dim), jnp.float32)
        p["be" + name] = jnp.zeros((1, hidden_dim), jnp.float32)
    p["gp"] = jnp.ones((), jnp.float32)    # bn_params (C=1) gamma
    p["bep"] = jnp.zeros((), jnp.float32)  # bn_params (C=1) beta
    return p


def reference(h, p, batch_size, sample_size, c_dim):
    # Pure-JAX port of the PyTorch module (training-mode BN) for correctness check.
    # Note: it DOES add the linear biases b0/b1/b2 — they cancel under BN, proving the
    # kernel's bias-free formulation is equivalent.
    def bn(x, g, b, eps):
        mu = x.mean(0, keepdims=True)
        var = ((x - mu) ** 2).mean(0, keepdims=True)
        return (x - mu) / jnp.sqrt(var + eps) * g + b

    relu = lambda x: jnp.maximum(x, 0.0)
    e = relu(bn(h @ p["w0"] + p["b0"], p["g0"], p["be0"], 1e-5))
    e = e.reshape(batch_size, sample_size, -1).mean(1)
    e = relu(bn(e @ p["w1"] + p["b1"], p["g1"], p["be1"], 1e-5))
    e = relu(bn(e @ p["w2"] + p["b2"], p["g2"], p["be2"], 1e-5))
    e = e @ p["wp"] + p["bp"]
    mu = e.mean()
    var = ((e - mu) ** 2).mean()
    e = (e - mu) / jnp.sqrt(var + 1e-3) * p["gp"] + p["bep"]
    return e[:, :c_dim], e[:, c_dim:]


if __name__ == "__main__":
    batch_size, sample_size = 2, 8
    n_features, hidden_dim, c_dim = 32, 32, 8   # n_hidden unused by this forward pass

    key = jax.random.PRNGKey(0)
    kh, kp = jax.random.split(key)
    h = jax.random.normal(kh, (batch_size * sample_size, n_features), jnp.float32)
    params = make_params(kp, n_features, hidden_dim, c_dim)

    # Production path: bf16 matmul operands (default), row-tiled grid (row_tile=8
    # gives 2 pipelined grid steps at this toy size).  Just run + block on it.
    mb, lb = statistic_network(
        h, params, batch_size=batch_size, sample_size=sample_size, c_dim=c_dim,
        row_tile=8)
    jax.block_until_ready((mb, lb))

    # f32 matmul path so the numerical check against the f32 reference stays tight.
    mean, logvar = statistic_network(
        h, params, batch_size=batch_size, sample_size=sample_size, c_dim=c_dim,
        matmul_dtype=jnp.float32, row_tile=8)
    jax.block_until_ready((mean, logvar))

    rm, rl = reference(h, params, batch_size, sample_size, c_dim)
    assert jnp.allclose(mean, rm, atol=2e-3, rtol=2e-3)
    assert jnp.allclose(logvar, rl, atol=2e-3, rtol=2e-3)

    print("KERNEL_OK")
</pallas_src>

<mosaic_0001>
module attributes {stable_mosaic.version = 11 : i64} {
  func.func @statnet_kernel(%arg0: i32, %arg1: memref<8x32xf32, #tpu.memory_space<vmem>>, %arg2: memref<32x32xbf16, #tpu.memory_space<vmem>>, %arg3: memref<32x32xbf16, #tpu.memory_space<vmem>>, %arg4: memref<32x32xbf16, #tpu.memory_space<vmem>>, %arg5: memref<32x128xbf16, #tpu.memory_space<vmem>>, %arg6: memref<6x32xf32, #tpu.memory_space<vmem>>, %arg7: memref<3x128xf32, #tpu.memory_space<vmem>>, %arg8: memref<2x128xf32, #tpu.memory_space<vmem>>, %arg9: memref<16x32xf32, #tpu.memory_space<vmem>>, %arg10: memref<1x32xf32, #tpu.memory_space<vmem>>, %arg11: memref<1x32xf32, #tpu.memory_space<vmem>>) attributes {dimension_semantics = [#tpu.dimension_semantics<arbitrary>], iteration_bounds = array<i64: 2>, scalar_prefetch = 0 : i64, scratch_operands = 3 : i64, tpu.core_type = #tpu.core_type<tc>, window_params = [{transform_indices = @transform_0, window_bounds = array<i64: 8, 32>}, {pipeline_mode = #tpu.pipeline_mode<synchronous>, transform_indices = @transform_1, window_bounds = array<i64: 32, 32>}, {pipeline_mode = #tpu.pipeline_mode<synchronous>, transform_indices = @transform_2, window_bounds = array<i64: 32, 32>}, {pipeline_mode = #tpu.pipeline_mode<synchronous>, transform_indices = @transform_3, window_bounds = array<i64: 32, 32>}, {pipeline_mode = #tpu.pipeline_mode<synchronous>, transform_indices = @transform_4, window_bounds = array<i64: 32, 128>}, {pipeline_mode = #tpu.pipeline_mode<synchronous>, transform_indices = @transform_5, window_bounds = array<i64: 6, 32>}, {pipeline_mode = #tpu.pipeline_mode<synchronous>, transform_indices = @transform_6, window_bounds = array<i64: 3, 128>}, {pipeline_mode = #tpu.pipeline_mode<synchronous>, transform_indices = @transform_7, window_bounds = array<i64: 2, 128>}]} {
    %c0_i32 = arith.constant 0 : i32
    %0 = arith.cmpi eq, %arg0, %c0_i32 : i32
    %1 = arith.extui %0 : i1 to i32
    %c0_i32_0 = arith.constant 0 : i32
    %2 = arith.cmpi ne, %1, %c0_i32_0 : i32
    scf.if %2 {
      %cst_16 = arith.constant 0.000000e+00 : f32
      %25 = vector.broadcast %cst_16 : f32 to vector<1x32xf32>
      %c0_17 = arith.constant 0 : index
      %c0_18 = arith.constant 0 : index
      %26 = vector.load %arg10[%c0_17, %c0_18] : memref<1x32xf32, #tpu.memory_space<vmem>>, vector<1x32xf32>
      tpu.vector_store %arg10[%c0_17, %c0_18], %25 {strides = array<i32>} : memref<1x32xf32, #tpu.memory_space<vmem>>, vector<1x32xf32>,
      %cst_19 = arith.constant 0.000000e+00 : f32
      %27 = vector.broadcast %cst_19 : f32 to vector<1x32xf32>
      %c0_20 = arith.constant 0 : index
      %c0_21 = arith.constant 0 : index
      %28 = vector.load %arg11[%c0_20, %c0_21] : memref<1x32xf32, #tpu.memory_space<vmem>>, vector<1x32xf32>
      tpu.vector_store %arg11[%c0_20, %c0_21], %27 {strides = array<i32>} : memref<1x32xf32, #tpu.memory_space<vmem>>, vector<1x32xf32>,
    } else {
    }
    %c0 = arith.constant 0 : index
    %c0_1 = arith.constant 0 : index
    %3 = vector.load %arg1[%c0, %c0_1] : memref<8x32xf32, #tpu.memory_space<vmem>>, vector<8x32xf32>
    %c0_2 = arith.constant 0 : index
    %c0_3 = arith.constant 0 : index
    %4 = vector.load %arg2[%c0_2, %c0_3] : memref<32x32xbf16, #tpu.memory_space<vmem>>, vector<32x32xbf16>
    %5 = arith.truncf %3 : vector<8x32xf32> to vector<8x32xbf16>
    %cst = arith.constant dense<0.000000e+00> : vector<8x32xf32>
    %6 = tpu.matmul %5, %4, %cst {dimension_numbers = #tpu.dot_dimension_numbers<[1], [0], [0], [1], [0, 0, 1, 1], [], []>} : vector<8x32xbf16>, vector<32x32xbf16>, vector<8x32xf32> -> vector<8x32xf32>
    %c8_i32 = arith.constant 8 : i32
    %7 = arith.muli %arg0, %c8_i32 : i32
    %8 = tpu.assume_multiple %7, 8 : i32
    %9 = arith.index_cast %8 : i32 to index
    %c0_4 = arith.constant 0 : index
    %10 = vector.load %arg9[%9, %c0_4] : memref<16x32xf32, #tpu.memory_space<vmem>>, vector<8x32xf32>
    tpu.vector_store %arg9[%9, %c0_4], %6 {strides = array<i32>} : memref<16x32xf32, #tpu.memory_space<vmem>>, vector<8x32xf32>,
    %c0_5 = arith.constant 0 : index
    %c0_6 = arith.constant 0 : index
    %11 = vector.load %arg10[%c0_5, %c0_6] : memref<1x32xf32, #tpu.memory_space<vmem>>, vector<1x32xf32>
    %cst_7 = arith.constant dense<0.000000e+00> : vector<32xf32>
    %12 = vector.multi_reduction <add>, %6, %cst_7 [0] : vector<8x32xf32> to vector<32xf32>
    %13 = vector.shape_cast %12 : vector<32xf32> to vector<1x32xf32>
    %14 = arith.addf %11, %13 : vector<1x32xf32>
    %c0_8 = arith.constant 0 : index
    %c0_9 = arith.constant 0 : index
    %15 = vector.load %arg10[%c0_8, %c0_9] : memref<1x32xf32, #tpu.memory_space<vmem>>, vector<1x32xf32>
    tpu.vector_store %arg10[%c0_8, %c0_9], %14 {strides = array<i32>} : memref<1x32xf32, #tpu.memory_space<vmem>>, vector<1x32xf32>,
    %c0_10 = arith.constant 0 : index
    %c0_11 = arith.constant 0 : index
    %16 = vector.load %arg11[%c0_10, %c0_11] : memref<1x32xf32, #tpu.memory_space<vmem>>, vector<1x32xf32>
    %17 = arith.mulf %6, %6 : vector<8x32xf32>
    %cst_12 = arith.constant dense<0.000000e+00> : vector<32xf32>
    %18 = vector.multi_reduction <add>, %17, %cst_12 [0] : vector<8x32xf32> to vector<32xf32>
    %19 = vector.shape_cast %18 : vector<32xf32> to vector<1x32xf32>
    %20 = arith.addf %16, %19 : vector<1x32xf32>
    %c0_13 = arith.constant 0 : index
    %c0_14 = arith.constant 0 : index
    %21 = vector.load %arg11[%c0_13, %c0_14] : memref<1x32xf32, #tpu.memory_space<vmem>>, vector<1x32xf32>
    tpu.vector_store %arg11[%c0_13, %c0_14], %20 {strides = array<i32>} : memref<1x32xf32, #tpu.memory_space<vmem>>, vector<1x32xf32>,
    %c1_i32 = arith.constant 1 : i32
    %22 = arith.cmpi eq, %arg0, %c1_i32 : i32
    %23 = arith.extui %22 : i1 to i32
    %c0_i32_15 = arith.constant 0 : i32
    %24 = arith.cmpi ne, %23, %c0_i32_15 : i32
    scf.if %24 {
      %c0_16 = arith.constant 0 : index
      %c0_17 = arith.constant 0 : index
      %25 = vector.load %arg6[%c0_16, %c0_17] : memref<6x32xf32, #tpu.memory_space<vmem>>, vector<6x32xf32>
      %c0_18 = arith.constant 0 : index
      %c0_19 = arith.constant 0 : index
      %26 = vector.load %arg7[%c0_18, %c0_19] : memref<3x128xf32, #tpu.memory_space<vmem>>, vector<3x128xf32>
      %c0_20 = arith.constant 0 : index
      %c0_21 = arith.constant 0 : index
      %27 = vector.load %arg10[%c0_20, %c0_21] : memref<1x32xf32, #tpu.memory_space<vmem>>, vector<1x32xf32>
      %cst_22 = arith.constant 6.250000e-02 : f32
      %28 = vector.broadcast %cst_22 : f32 to vector<1x32xf32>
      %29 = arith.mulf %27, %28 : vector<1x32xf32>
      %c0_23 = arith.constant 0 : index
      %c0_24 = arith.constant 0 : index
      %30 = vector.load %arg11[%c0_23, %c0_24] : memref<1x32xf32, #tpu.memory_space<vmem>>, vector<1x32xf32>
      %cst_25 = arith.constant 6.250000e-02 : f32
      %31 = vector.broadcast %cst_25 : f32 to vector<1x32xf32>
      %32 = arith.mulf %30, %31 : vector<1x32xf32>
      %33 = arith.mulf %29, %29 : vector<1x32xf32>
      %34 = arith.subf %32, %33 : vector<1x32xf32>
      %cst_26 = arith.constant 0.000000e+00 : f32
      %35 = vector.broadcast %cst_26 : f32 to vector<1x32xf32>
      %36 = arith.maximumf %34, %35 : vector<1x32xf32>
      %c0_27 = arith.constant 0 : index
      %c0_28 = arith.constant 0 : index
      %37 = vector.load %arg9[%c0_27, %c0_28] : memref<16x32xf32, #tpu.memory_space<vmem>>, vector<16x32xf32>
      %38 = vector.broadcast %29 : vector<1x32xf32> to vector<16x32xf32>
      %39 = arith.subf %37, %38 : vector<16x32xf32>
      %cst_29 = arith.constant 9.99999974E-6 : f32
      %40 = vector.broadcast %cst_29 : f32 to vector<1x32xf32>
      %41 = arith.addf %36, %40 : vector<1x32xf32>
      %42 = math.rsqrt %41 : vector<1x32xf32>
      %43 = vector.broadcast %42 : vector<1x32xf32> to vector<16x32xf32>
      %44 = arith.mulf %39, %43 : vector<16x32xf32>
      %45 = vector.extract_strided_slice %25 {offsets = [0, 0], sizes = [1, 32], strides = [1, 1]} : vector<6x32xf32> to vector<1x32xf32>
      %46 = vector.broadcast %45 : vector<1x32xf32> to vector<16x32xf32>
      %47 = arith.mulf %44, %46 : vector<16x32xf32>
      %48 = vector.extract_strided_slice %25 {offsets = [1, 0], sizes = [1, 32], strides = [1, 1]} : vector<6x32xf32> to vector<1x32xf32>
      %49 = vector.broadcast %48 : vector<1x32xf32> to vector<16x32xf32>
      %50 = arith.addf %47, %49 : vector<16x32xf32>
      %cst_30 = arith.constant 0.000000e+00 : f32
      %51 = vector.broadcast %cst_30 : f32 to vector<16x32xf32>
      %52 = arith.maximumf %50, %51 : vector<16x32xf32>
      %53 = vector.shape_cast %52 : vector<16x32xf32> to vector<2x8x32xf32>
      %cst_31 = arith.constant dense<0.000000e+00> : vector<2x32xf32>
      %54 = vector.multi_reduction <add>, %53, %cst_31 [1] : vector<2x8x32xf32> to vector<2x32xf32>
      %cst_32 = arith.constant 8.000000e+00 : f32
      %55 = vector.broadcast %cst_32 : f32 to vector<2x32xf32>
      %56 = arith.divf %54, %55 : vector<2x32xf32>
      %c0_33 = arith.constant 0 : index
      %c0_34 = arith.constant 0 : index
      %57 = vector.load %arg3[%c0_33, %c0_34] : memref<32x32xbf16, #tpu.memory_space<vmem>>, vector<32x32xbf16>
      %58 = arith.truncf %56 : vector<2x32xf32> to vector<2x32xbf16>
      %cst_35 = arith.constant dense<0.000000e+00> : vector<2x32xf32>
      %59 = tpu.matmul %58, %57, %cst_35 {dimension_numbers = #tpu.dot_dimension_numbers<[1], [0], [0], [1], [0, 0, 1, 1], [], []>} : vector<2x32xbf16>, vector<32x32xbf16>, vector<2x32xf32> -> vector<2x32xf32>
      %60 = vector.extract_strided_slice %25 {offsets = [2, 0], sizes = [1, 32], strides = [1, 1]} : vector<6x32xf32> to vector<1x32xf32>
      %61 = vector.extract_strided_slice %25 {offsets = [3, 0], sizes = [1, 32], strides = [1, 1]} : vector<6x32xf32> to vector<1x32xf32>
      %cst_36 = arith.constant dense<0.000000e+00> : vector<32xf32>
      %62 = vector.multi_reduction <add>, %59, %cst_36 [0] : vector<2x32xf32> to vector<32xf32>
      %63 = vector.shape_cast %62 : vector<32xf32> to vector<1x32xf32>
      %cst_37 = arith.constant 5.000000e-01 : f32
      %64 = vector.broadcast %cst_37 : f32 to vector<1x32xf32>
      %65 = arith.mulf %63, %64 : vector<1x32xf32>
      %66 = arith.mulf %59, %59 : vector<2x32xf32>
      %cst_38 = arith.constant dense<0.000000e+00> : vector<32xf32>
      %67 = vector.multi_reduction <add>, %66, %cst_38 [0] : vector<2x32xf32> to vector<32xf32>
      %68 = vector.shape_cast %67 : vector<32xf32> to vector<1x32xf32>
      %cst_39 = arith.constant 5.000000e-01 : f32
      %69 = vector.broadcast %cst_39 : f32 to vector<1x32xf32>
      %70 = arith.mulf %68, %69 : vector<1x32xf32>
      %71 = arith.mulf %65, %65 : vector<1x32xf32>
      %72 = arith.subf %70, %71 : vector<1x32xf32>
      %cst_40 = arith.constant 0.000000e+00 : f32
      %73 = vector.broadcast %cst_40 : f32 to vector<1x32xf32>
      %74 = arith.maximumf %72, %73 : vector<1x32xf32>
      %75 = vector.broadcast %65 : vector<1x32xf32> to vector<2x32xf32>
      %76 = arith.subf %59, %75 : vector<2x32xf32>
      %cst_41 = arith.constant 9.99999974E-6 : f32
      %77 = vector.broadcast %cst_41 : f32 to vector<1x32xf32>
      %78 = arith.addf %74, %77 : vector<1x32xf32>
      %79 = math.rsqrt %78 : vector<1x32xf32>
      %80 = vector.broadcast %79 : vector<1x32xf32> to vector<2x32xf32>
      %81 = arith.mulf %76, %80 : vector<2x32xf32>
      %82 = vector.broadcast %60 : vector<1x32xf32> to vector<2x32xf32>
      %83 = arith.mulf %81, %82 : vector<2x32xf32>
      %84 = vector.broadcast %61 : vector<1x32xf32> to vector<2x32xf32>
      %85 = arith.addf %83, %84 : vector<2x32xf32>
      %cst_42 = arith.constant 0.000000e+00 : f32
      %86 = vector.broadcast %cst_42 : f32 to vector<2x32xf32>
      %87 = arith.maximumf %85, %86 : vector<2x32xf32>
      %c0_43 = arith.constant 0 : index
      %c0_44 = arith.constant 0 : index
      %88 = vector.load %arg4[%c0_43, %c0_44] : memref<32x32xbf16, #tpu.memory_space<vmem>>, vector<32x32xbf16>
      %89 = arith.truncf %87 : vector<2x32xf32> to vector<2x32xbf16>
      %cst_45 = arith.constant dense<0.000000e+00> : vector<2x32xf32>
      %90 = tpu.matmul %89, %88, %cst_45 {dimension_numbers = #tpu.dot_dimension_numbers<[1], [0], [0], [1], [0, 0, 1, 1], [], []>} : vector<2x32xbf16>, vector<32x32xbf16>, vector<2x32xf32> -> vector<2x32xf32>
      %91 = vector.extract_strided_slice %25 {offsets = [4, 0], sizes = [1, 32], strides = [1, 1]} : vector<6x32xf32> to vector<1x32xf32>
      %92 = vector.extract_strided_slice %25 {offsets = [5, 0], sizes = [1, 32], strides = [1, 1]} : vector<6x32xf32> to vector<1x32xf32>
      %cst_46 = arith.constant dense<0.000000e+00> : vector<32xf32>
      %93 = vector.multi_reduction <add>, %90, %cst_46 [0] : vector<2x32xf32> to vector<32xf32>
      %94 = vector.shape_cast %93 : vector<32xf32> to vector<1x32xf32>
      %cst_47 = arith.constant 5.000000e-01 : f32
      %95 = vector.broadcast %cst_47 : f32 to vector<1x32xf32>
      %96 = arith.mulf %94, %95 : vector<1x32xf32>
      %97 = arith.mulf %90, %90 : vector<2x32xf32>
      %cst_48 = arith.constant dense<0.000000e+00> : vector<32xf32>
      %98 = vector.multi_reduction <add>, %97, %cst_48 [0] : vector<2x32xf32> to vector<32xf32>
      %99 = vector.shape_cast %98 : vector<32xf32> to vector<1x32xf32>
      %cst_49 = arith.constant 5.000000e-01 : f32
      %100 = vector.broadcast %cst_49 : f32 to vector<1x32xf32>
      %101 = arith.mulf %99, %100 : vector<1x32xf32>
      %102 = arith.mulf %96, %96 : vector<1x32xf32>
      %103 = arith.subf %101, %102 : vector<1x32xf32>
      %cst_50 = arith.constant 0.000000e+00 : f32
      %104 = vector.broadcast %cst_50 : f32 to vector<1x32xf32>
      %105 = arith.maximumf %103, %104 : vector<1x32xf32>
      %106 = vector.broadcast %96 : vector<1x32xf32> to vector<2x32xf32>
      %107 = arith.subf %90, %106 : vector<2x32xf32>
      %cst_51 = arith.constant 9.99999974E-6 : f32
      %108 = vector.broadcast %cst_51 : f32 to vector<1x32xf32>
      %109 = arith.addf %105, %108 : vector<1x32xf32>
      %110 = math.rsqrt %109 : vector<1x32xf32>
      %111 = vector.broadcast %110 : vector<1x32xf32> to vector<2x32xf32>
      %112 = arith.mulf %107, %111 : vector<2x32xf32>
      %113 = vector.broadcast %91 : vector<1x32xf32> to vector<2x32xf32>
      %114 = arith.mulf %112, %113 : vector<2x32xf32>
      %115 = vector.broadcast %92 : vector<1x32xf32> to vector<2x32xf32>
      %116 = arith.addf %114, %115 : vector<2x32xf32>
      %cst_52 = arith.constant 0.000000e+00 : f32
      %117 = vector.broadcast %cst_52 : f32 to vector<2x32xf32>
      %118 = arith.maximumf %116, %117 : vector<2x32xf32>
      %c0_53 = arith.constant 0 : index
      %c0_54 = arith.constant 0 : index
      %119 = vector.load %arg5[%c0_53, %c0_54] : memref<32x128xbf16, #tpu.memory_space<vmem>>, vector<32x128xbf16>
      %120 = arith.truncf %118 : vector<2x32xf32> to vector<2x32xbf16>
      %cst_55 = arith.constant dense<0.000000e+00> : vector<2x128xf32>
      %121 = tpu.matmul %120, %119, %cst_55 {dimension_numbers = #tpu.dot_dimension_numbers<[1], [0], [0], [1], [0, 0, 1, 1], [], []>} : vector<2x32xbf16>, vector<32x128xbf16>, vector<2x128xf32> -> vector<2x128xf32>
      %122 = vector.extract_strided_slice %26 {offsets = [0, 0], sizes = [1, 128], strides = [1, 1]} : vector<3x128xf32> to vector<1x128xf32>
      %123 = vector.broadcast %122 : vector<1x128xf32> to vector<2x128xf32>
      %124 = arith.addf %121, %123 : vector<2x128xf32>
      %125 = vector.shape_cast %124 : vector<2x128xf32> to vector<1x2x128xf32>
      %cst_56 = arith.constant dense<0.000000e+00> : vector<1xf32>
      %126 = vector.multi_reduction <add>, %125, %cst_56 [1, 2] : vector<1x2x128xf32> to vector<1xf32>
      %127 = vector.shape_cast %126 : vector<1xf32> to vector<1x1x1xf32>
      %128 = vector.extract %127[0, 0, 0] : f32 from vector<1x1x1xf32>
      %cst_57 = arith.constant 3.125000e-02 : f32
      %129 = arith.mulf %128, %cst_57 : f32
      %130 = arith.mulf %124, %124 : vector<2x128xf32>
      %131 = vector.shape_cast %130 : vector<2x128xf32> to vector<1x2x128xf32>
      %cst_58 = arith.constant dense<0.000000e+00> : vector<1xf32>
      %132 = vector.multi_reduction <add>, %131, %cst_58 [1, 2] : vector<1x2x128xf32> to vector<1xf32>
      %133 = vector.shape_cast %132 : vector<1xf32> to vector<1x1x1xf32>
      %134 = vector.extract %133[0, 0, 0] : f32 from vector<1x1x1xf32>
      %cst_59 = arith.constant 3.125000e-02 : f32
      %135 = arith.mulf %134, %cst_59 : f32
      %136 = arith.mulf %129, %129 : f32
      %137 = arith.subf %135, %136 : f32
      %cst_60 = arith.constant 0.000000e+00 : f32
      %138 = arith.maximumf %137, %cst_60 : f32
      %139 = vector.broadcast %129 : f32 to vector<2x128xf32>
      %140 = arith.subf %124, %139 : vector<2x128xf32>
      %cst_61 = arith.constant 1.000000e-03 : f32
      %141 = arith.addf %138, %cst_61 : f32
      %142 = math.rsqrt %141 : f32
      %143 = vector.broadcast %142 : f32 to vector<2x128xf32>
      %144 = arith.mulf %140, %143 : vector<2x128xf32>
      %145 = vector.extract_strided_slice %26 {offsets = [1, 0], sizes = [1, 128], strides = [1, 1]} : vector<3x128xf32> to vector<1x128xf32>
      %146 = vector.broadcast %145 : vector<1x128xf32> to vector<2x128xf32>
      %147 = arith.mulf %144, %146 : vector<2x128xf32>
      %148 = vector.extract_strided_slice %26 {offsets = [2, 0], sizes = [1, 128], strides = [1, 1]} : vector<3x128xf32> to vector<1x128xf32>
      %149 = vector.broadcast %148 : vector<1x128xf32> to vector<2x128xf32>
      %150 = arith.addf %147, %149 : vector<2x128xf32>
      %c0_62 = arith.constant 0 : index
      %c0_63 = arith.constant 0 : index
      %151 = vector.load %arg8[%c0_62, %c0_63] : memref<2x128xf32, #tpu.memory_space<vmem>>, vector<2x128xf32>
      tpu.vector_store %arg8[%c0_62, %c0_63], %150 {strides = array<i32>} : memref<2x128xf32, #tpu.memory_space<vmem>>, vector<2x128xf32>,
    } else {
    }
    return
  }
  func.func @transform_0(%arg0: i32) -> (i32, i32) {
    %c0_i32 = arith.constant 0 : i32
    %c0_i32_0 = arith.constant 0 : i32
    return %arg0, %c0_i32 : i32, i32
  }
  func.func @transform_1(%arg0: i32) -> (i32, i32) {
    %c0_i32 = arith.constant 0 : i32
    %c0_i32_0 = arith.constant 0 : i32
    %c0_i32_1 = arith.constant 0 : i32
    return %c0_i32, %c0_i32_0 : i32, i32
  }
  func.func @transform_2(%arg0: i32) -> (i32, i32) {
    %c0_i32 = arith.constant 0 : i32
    %c0_i32_0 = arith.constant 0 : i32
    %c0_i32_1 = arith.constant 0 : i32
    return %c0_i32, %c0_i32_0 : i32, i32
  }
  func.func @transform_3(%arg0: i32) -> (i32, i32) {
    %c0_i32 = arith.constant 0 : i32
    %c0_i32_0 = arith.constant 0 : i32
    %c0_i32_1 = arith.constant 0 : i32
    return %c0_i32, %c0_i32_0 : i32, i32
  }
  func.func @transform_4(%arg0: i32) -> (i32, i32) {
    %c0_i32 = arith.constant 0 : i32
    %c0_i32_0 = arith.constant 0 : i32
    %c0_i32_1 = arith.constant 0 : i32
    return %c0_i32, %c0_i32_0 : i32, i32
  }
  func.func @transform_5(%arg0: i32) -> (i32, i32) {
    %c0_i32 = arith.constant 0 : i32
    %c0_i32_0 = arith.constant 0 : i32
    %c0_i32_1 = arith.constant 0 : i32
    return %c0_i32, %c0_i32_0 : i32, i32
  }
  func.func @transform_6(%arg0: i32) -> (i32, i32) {
    %c0_i32 = arith.constant 0 : i32
    %c0_i32_0 = arith.constant 0 : i32
    %c0_i32_1 = arith.constant 0 : i32
    return %c0_i32, %c0_i32_0 : i32, i32
  }
  func.func @transform_7(%arg0: i32) -> (i32, i32) {
    %c0_i32 = arith.constant 0 : i32
    %c0_i32_0 = arith.constant 0 : i32
    %c0_i32_1 = arith.constant 0 : i32
    return %c0_i32, %c0_i32_0 : i32, i32
  }
}

</mosaic_0001>

<bundles_post_ra>
// kernel: tpu_custom_call.1
= control target key start
LH: loop header
LB: loop body
LE: loop exit
PB: predicated region body
PF: predicated region fallthrough
CT: control target
= control target key end

     0   :  { %12 = vsyncpa [#allocation6], 0  ;;  %s1682_s0 = inlined_call_operand.hbm [shape: f32[16,32], index: 0, kind: input, shape index: {}]   ;;  %s1683_s1 = inlined_call_operand.hbm [shape: bf16[32,32], index: 1, kind: input, shape index: {}]   ;;  %s1684_s2 = inlined_call_operand.hbm [shape: bf16[32,32], index: 2, kind: input, shape index: {}]   ;;  %s1685_s3 = inlined_call_operand.hbm [shape: bf16[32,32], index: 3, kind: input, shape index: {}]   ;;  %s1686_s4 = inlined_call_operand.hbm [shape: bf16[32,128], index: 4, kind: input, shape index: {}]   ;;  %s1687_s5 = inlined_call_operand.vmem [shape: f32[6,32], index: 5, kind: input, shape index: {}]   ;;  %s1688_s6 = inlined_call_operand.hbm [shape: f32[3,128], index: 6, kind: input, shape index: {}]   ;;  %s1689_s7 = inlined_call_operand.hbm [shape: f32[2,128], index: 7, kind: output, shape index: {}]  }
   0x1   :  { %14 = vsyncpa [#allocation6 + $0x1], 0 }
   0x2   :  { %15 = vsyncpa [#allocation9], 0 }
   0x3   :  { %16 = vsyncpa [#allocation12], 0 }
   0x4   :  { %17 = vsyncpa [#allocation15], 0 }
   0x5   :  { %18 = vsyncpa [#allocation7], 0  ;;  %s1424_s24 = smov 0   ;;  %s1426_s25 = smov 0  }
   0x6   :  { %s1428_s26 = smov 0   ;;  %s1430_s27 = smov 0  }
   0x7 LB: > { %s1369_s28 = smov [#allocation8]   ;;  %s1445_s30 = sadd.s32 4294967295, %s1367_s27   ;;  %s1367_s27 = sphi %s1430_s27, %s1710_s27   ;;  %s1363_s26 = sphi %s1428_s26, %s1709_s26   ;;  %s1359_s25 = sphi %s1426_s25, %s1708_s25   ;;  %s1355_s24 = sphi %s1424_s24, %s1707_s24  }
   0x8   : > { %s214_s29 = sshll.u32 %s1369_s28, 4  ;;  %p929_p0 = scmp.ge.s32.totalorder %s1367_s27, 1  ;;  %s215_s29 = int_to_ptr.vmem [resolvable:$true] %s214_s29 }
   0x9   : > { %p1690_p1 = scmp.eq.s32.totalorder %s1445_s30, 0  ;;  %p202_p2 = scmp.lt.s32.totalorder %s1367_s27, 3 }
   0xa   : > { %s1370_s9 = smov [#allocation11]   ;;  %s1371_s12 = smov [#allocation10]  }
   0xb   : > { %p1451_p4 = pnand %p929_p0, %p202_p2  ;;  %s240_s10 = sshll.u32 %s1370_s9, 4  ;;  %s1463_s10 = int_to_ptr.vmem [resolvable:$true] %s240_s10 }
   0xc   : > { %s227_s13 = sshll.u32 %s1371_s12, 4  ;;  %s1146_s15 = scalar_lea.vmem %s215_s29, 256  ;;  %s1465_s13 = int_to_ptr.vmem [resolvable:$true] %s227_s13 }
   0xd   : > { %s1693_s8 = scalar_select %p1451_p4, 1, 0 }
   0xe   : > { %p1040_p5 = pneg %p1451_p4  ;;  %p1147_p8 = scmp.ne.s32.totalorder %s215_s29, %s1146_s15 }
   0xf   : > { %p1154_p11 = scmp.lt.s32.totalorder %s215_s29, %s215_s29  ;;  %p1155_p12 = scmp.lt.s32.totalorder %s1146_s15, %s1146_s15 }
  0x10   : > { %p1459_p6 = pnand %p1040_p5, %p1690_p1 }
  0x11   : > { %p1156_p13 = por %p1155_p12, %p1154_p11 }
  0x12   : > { %p1469_p7 = pneg %p1459_p6 }
  0x14   : > { %p1149_p9 = pnand %p1147_p8, %p1469_p7 }
  0x16   : > { %p1150_p10 = pneg %p1149_p9 }
  0x18   : > { %p1157_p0 = pnand %p1156_p13, %p1150_p10 }
  0x1a   : > { %1160 = shalt.err (!%p1157_p0)
}
  0x1b   : > { %s1372_s16 = smov 64   ;;  %s1373_s17 = smov 4  }
  0x1c   : > { %1043 = dma.hbm_to_vmem [thread:$0]  (!%p1459_p6), %s1683_s1, 256, %s215_s29, [#allocation9], %s1372_s16, %s1372_s16, %s1373_s17  }
  0x1d   : > { %s1172_s20 = scalar_lea.vmem %s1463_s10, 256  ;;  %p1180_p9 = scmp.lt.s32.totalorder %s1463_s10, %s1463_s10 }
  0x1e   : > { %p1173_p2 = scmp.ne.s32.totalorder %s1463_s10, %s1172_s20  ;;  %p1181_p10 = scmp.lt.s32.totalorder %s1172_s20, %s1172_s20 }
  0x20   : > { %p1175_p5 = pnand %p1173_p2, %p1469_p7  ;;  %p1182_p11 = por %p1181_p10, %p1180_p9 }
  0x22   : > { %p1176_p8 = pneg %p1175_p5 }
  0x24   : > { %p1183_p12 = pnand %p1182_p11, %p1176_p8 }
  0x26   : > { %1186 = shalt.err (!%p1183_p12)
}
  0x27   : > { %1049 = dma.hbm_to_vmem [thread:$0]  (!%p1459_p6), %s1685_s3, 256, %s1463_s10, [#allocation12], %s1372_s16, %s1372_s16, %s1373_s17  }
  0x28   : > { %s1198_s23 = scalar_lea.vmem %s1465_s13, 256  ;;  %p1206_p5 = scmp.lt.s32.totalorder %s1465_s13, %s1465_s13 }
  0x29   : > { %p1199_p13 = scmp.ne.s32.totalorder %s1465_s13, %s1198_s23  ;;  %p1207_p8 = scmp.lt.s32.totalorder %s1198_s23, %s1198_s23 }
  0x2b   : > { %p1201_p0 = pnand %p1199_p13, %p1469_p7  ;;  %p1208_p9 = por %p1207_p8, %p1206_p5 }
  0x2d   : > { %p1202_p2 = pneg %p1201_p0 }
  0x2f   : > { %p1209_p10 = pnand %p1208_p9, %p1202_p2 }
  0x31   : > { %1212 = shalt.err (!%p1209_p10)
}
  0x32   : > { %1046 = dma.hbm_to_vmem [thread:$0]  (!%p1459_p6), %s1684_s2, 256, %s1465_s13, [#allocation9], %s1372_s16, %s1372_s16, %s1373_s17  }
  0x33   : > { %s1374_s9 = smov [#allocation13]   ;;  %s1375_s12 = smov [#allocation14]  }
  0x34   : > { %s253_s10 = sshll.u32 %s1374_s9, 4  ;;  %s270_s15 = sshll.u32 %s1375_s12, 4  ;;  %s254_s10 = int_to_ptr.vmem [resolvable:$true] %s253_s10  ;;  %s271_s15 = int_to_ptr.vmem [resolvable:$true] %s270_s15 }
  0x35   : > { %s1224_s18 = scalar_lea.vmem %s254_s10, 256  ;;  %p1232_p0 = scmp.lt.s32.totalorder %s254_s10, %s254_s10 }
  0x36   : > { %p1225_p11 = scmp.ne.s32.totalorder %s254_s10, %s1224_s18  ;;  %p1233_p2 = scmp.lt.s32.totalorder %s1224_s18, %s1224_s18 }
  0x38   : > { %p1227_p12 = pnand %p1225_p11, %p1469_p7  ;;  %p1234_p5 = por %p1233_p2, %p1232_p0 }
  0x3a   : > { %p1228_p13 = pneg %p1227_p12 }
  0x3c   : > { %p1235_p8 = pnand %p1234_p5, %p1228_p13 }
  0x3e   : > { %1238 = shalt.err (!%p1235_p8)
}
  0x3f   : > { %1052 = dma.hbm_to_vmem [thread:$0]  (!%p1459_p6), %s1686_s4, 256, %s254_s10, [#allocation12], %s1372_s16, %s1372_s16, %s1373_s17  }
  0x40   : > { %s1250_s20 = scalar_lea.vmem %s271_s15, 64  ;;  %p1258_p12 = scmp.lt.s32.totalorder %s271_s15, %s271_s15 }
  0x41   : > { %p1251_p9 = scmp.ne.s32.totalorder %s271_s15, %s1250_s20  ;;  %p1259_p0 = scmp.lt.s32.totalorder %s1250_s20, %s1250_s20 }
  0x43   : > { %p1253_p10 = pnand %p1251_p9, %p1469_p7  ;;  %p1260_p13 = por %p1259_p0, %p1258_p12 }
  0x45   : > { %p1254_p11 = pneg %p1253_p10 }
  0x47   : > { %p1261_p2 = pnand %p1260_p13, %p1254_p11 }
  0x49   : > { %1264 = shalt.err (!%p1261_p2)
}
  0x4a   : > { %1055 = dma.hbm_to_vmem [thread:$0]  (!%p1459_p6), %s1688_s6, 64, %s271_s15, [#allocation15]  }
  0x4b   : > { %s1531_s14 = sadd.s32 1, %s1367_s27   ;;  %s31_s16 = sadd.s32 1, %s1363_s26 }
  0x4c   : > { %s28_s11 = ssub.s32 %s1367_s27, %s1531_s14  ;;  %p38_p5 = scmp.ne.s32.totalorder %s1363_s26, %s1359_s25 }
  0x4d   : > { %p29_p7 = scmp.eq.s32.totalorder %s28_s11, 0  ;;  %p39_p8 = scmp.eq.s32.totalorder %s1367_s27, 0 }
  0x4e   : > { %p44_p9 = scmp.ne.s32.totalorder %s1359_s25, %s1355_s24  ;;  %p1065_p12 = scmp.lt.s32.totalorder %s1367_s27, 2 }
  0x4f   : > { %s1542_s17 = scalar_select %p29_p7, %s1363_s26, %s31_s16  }
  0x50   : > { %p40_p10 = por %p39_p8, %p38_p5  ;;  %p1546_p11 = por %p1690_p1, %p44_p9 }
  0x51   : > { %s281_s28 = sand.u32 1, %s1363_s26   ;;  %s937_s9 = sshll.u32 %s1367_s27, 7 }
  0x52   : > { %s1696_s23 = scalar_select %p1546_p11, 1, 0 }
  0x53   : > { %s936_s29 = sshll.u32 %s281_s28, 3  ;;  %s1556_s15 = scalar_lea.hbm %s1682_s0, %s937_s9 }
  0x54   : > { %s285_s24 = scalar_lea.vmem [#allocation5], %s936_s29  ;;  %p1558_p6 = pnand %p1065_p12, %p40_p10 }
  0x55   : > { %s292_s18 = sshll.u32 %s285_s24, 4  ;;  %s282_s19 = scalar_lea.sflag [#allocation6], %s281_s28  ;;  %s293_s18 = int_to_ptr.vmem [resolvable:$true] %s292_s18 }
  0x56   : > { %s1265_s20 = scalar_lea.hbm %s1556_s15, 128  ;;  %p1267_p13 = pneg %p1558_p6 }
  0x57   : > { %p1266_p0 = scmp.ne.s32.totalorder %s1556_s15, %s1265_s20  ;;  %s1270_s22 = scalar_lea.hbm %s1682_s0, 256 }
  0x58   : > { %p1271_p5 = scmp.lt.s32.totalorder %s1556_s15, %s1682_s0  ;;  %p1272_p8 = scmp.lt.s32.totalorder %s1270_s22, %s1265_s20 }
  0x59   : > { %p1268_p2 = pnand %p1267_p13, %p1266_p0 }
  0x5a   : > { %p1273_p9 = por %p1272_p8, %p1271_p5 }
  0x5b   : > { %p1269_p7 = pneg %p1268_p2 }
  0x5d   : > { %p1274_p10 = pnand %p1273_p9, %p1269_p7 }
  0x5f   : > { %1277 = shalt.err (!%p1274_p10)
}
  0x60   : > { %s1278_s29 = scalar_lea.vmem %s293_s18, 128  ;;  %s1376_s28 = smov [#allocation5]  }
  0x61   : > { %p1279_p12 = scmp.ne.s32.totalorder %s293_s18, %s1278_s29  ;;  %s1283_s9 = sshll.u32 %s1376_s28, 4  ;;  %s1284_s9 = int_to_ptr.vmem [resolvable:$false] %s1283_s9 }
  0x62   : > { %s1285_s10 = scalar_lea.vmem %s1284_s9, 256  ;;  %p1286_p0 = scmp.lt.s32.totalorder %s293_s18, %s1284_s9 }
  0x63   : > { %p1281_p3 = pnand %p1279_p12, %p1267_p13  ;;  %p1287_p2 = scmp.lt.s32.totalorder %s1285_s10, %s1278_s29 }
  0x65   : > { %p1282_p1 = pneg %p1281_p3  ;;  %p1288_p11 = por %p1287_p2, %p1286_p0 }
  0x67   : > { %p1289_p4 = pnand %p1288_p11, %p1282_p1 }
  0x69   : > { %1292 = shalt.err (!%p1289_p4)
}
  0x6a   : > { %1059 = dma.hbm_to_vmem [thread:$0]  (!%p1558_p6), %s1556_s15, 128, %s293_s18, %s282_s19  }
  0x6b   : > { %p1698_p7 = scmp.ne.s32.totalorder %s1693_s8, 0 }
  0x6c   : > { %s303_s12 = sand.u32 (!%p1698_p7), 1, %s1359_s25   ;;  %p1699_p3 = scmp.ne.s32.totalorder (!%p1698_p7), %s1696_s23, 0 }
  0x6d   : > { %301 = sbr.rel (%p1698_p7) target bundleno = 1389 (0x56d), region = 48  ;;  %s939_s24 = sshll.u32 (!%p1698_p7), %s303_s12, 3 }
  0x6e   : > { %s304_s20 = scalar_lea.sflag (!%p1698_p7), [#allocation6], %s303_s12  ;;  %s307_s27 = scalar_lea.vmem (!%p1698_p7), [#allocation5], %s939_s24 }
  0x72   : > { %1334 = dma.done.wait (%p1699_p3), %s304_s20, 128  }
  0x73   : > { %1336 = vsyncadd (%p1699_p3), %s304_s20, 4294967168  ;;  %p1700_p1 = scmp.eq.s32.totalorder %s1445_s30, 0 }
  0x75   : > { %1338 = dma.done.wait (%p1700_p1), [#allocation9], 512   ;;  %p1701_p4 = pmov %p1700_p1 }
  0x76   : > { %p1702_p11 = pmov %p1700_p1 }
  0x77   : > { %1340 = vsyncadd (%p1701_p4), [#allocation9], 4294966784 }
  0x78   : > { %1342 = dma.done.wait (%p1702_p11), [#allocation12], 512   ;;  %p1703_p6 = pmov %p1700_p1 }
  0x79   : > { %p1704_p13 = pmov %p1700_p1 }
  0x7a   : > { %1344 = vsyncadd (%p1703_p6), [#allocation12], 4294966784 }
  0x7b   : > { %1346 = dma.done.wait (%p1704_p13), [#allocation15], 64   ;;  %p1705_p5 = pmov %p1700_p1 }
  0x7c   : > { %p1706_p8 = scmp.ne.s32.totalorder %s1445_s30, 0 }
  0x7d   : > { %1348 = vsyncadd (%p1705_p5), [#allocation15], 4294967232 }
  0x7e   : > { %357 = sbr.rel (%p1706_p8) target bundleno = 133 (0x85), region = 76 }
  0x83   : > { %vm358_vm0 = vcmask 253952   ;;  %v1377_v0 = vmov 0.0  }
  0x84   : > { %359 = vst.msk [vmem:[#allocation3] sm:$0x1] %vm358_vm0, %v1377_v0  ;;  %360 = vst.msk [vmem:[#allocation4] sm:$0x1] %vm358_vm0, %v1377_v0 }
  0x85 PF: > { %v1119_v1 = vld [vmem:[#allocation8 + $0x8] sm:$0xff]   ;;  %v1378_v2 = vmov 0.0   ;;  %v1120_v3 = vld [vmem:[#allocation8] sm:$0xff]   ;;  %vm1379_vm1 = vmmov 0   ;;  %v361_v4 = vld [vmem:[%s307_s27] sm:$0xff]  ;;  %vm379_vm2 = vcmask 261120  }
  0x86   : > { %976 = vmatprep.subr.bf16.mxu0 %v1378_v2  ;;  %980 = vmatprep.mubr.msk.bf16.mxu0 %vm1379_vm1, %v1378_v2  ;;  %v366_v5 = vpack.c.bf16 %v361_v4, %v361_v4  ;;  %s949_s8 = sshll.u32 %s1445_s30, 3  ;;  %vm435_vm3 = vcmask 253952   ;;  %p950_p9 = scmp.ne.s32.totalorder %s1445_s30, 1 }
  0x87   : > { %977 = vmatpush3.bf16.msra.mxu0 %v1119_v1  ;;  %s424_s23 = scalar_lea.vmem [#allocation2], %s949_s8  ;;  %s1382_s29 = smov (!%p950_p9), 0.0  }
  0x88   : > { %978 = vmatprep.subr.bf16.mxu0 %v1378_v2 }
  0x8b   : > { %979 = vmatpush3.bf16.msra.mxu0 %v1120_v3  ;;  %v426_v22 = vld [vmem:[#allocation3] sm:$0x1]  ;;  %v437_v25 = vld [vmem:[#allocation4] sm:$0x1] }
  0x8e   : > { %981 = vmatmul.mubr.msk.bf16.vlgmr.msra.gmra.mxu0 %vm379_vm2, %v366_v5 }
 0x14e   : > { %v417_v6 = vpop.f32.mrf.mxu0 }
 0x14f   : > { %425 = vst.msk [vmem:[%s424_s23] sm:$0xff] %vm379_vm2, %v417_v6  ;;  %v427_v7 = vsel %vm379_vm2, %v417_v6, 0.0  ;;  %v438_v8 = vmul.f32 %v417_v6, %v417_v6 }
 0x150   : > { %v428_v9 = vrot.slane %v427_v7, 4  ;;  %v982_v10 = vpop.f32.mrf.mxu0 }
 0x151   : > { %v439_v11 = vsel %vm379_vm2, %v438_v8, 0.0 }
 0x152   : > { %v429_v12 = vadd.f32 %v428_v9, %v427_v7  ;;  %v440_v13 = vrot.slane %v439_v11, 4  ;;  %v420_v14 = vpop.f32.mrf.mxu0 }
 0x154   : > { %v430_v15 = vrot.slane %v429_v12, 2  ;;  %v441_v16 = vadd.f32 %v440_v13, %v439_v11  ;;  %v983_v17 = vpop.f32.mrf.mxu0 }
 0x156   : > { %v431_v18 = vadd.f32 %v430_v15, %v429_v12  ;;  %v442_v19 = vrot.slane %v441_v16, 2 }
 0x158   : > { %v432_v20 = vrot.slane %v431_v18, 1  ;;  %v443_v21 = vadd.f32 %v442_v19, %v441_v16 }
 0x15a   : > { %v433_v23 = vadd.f32 %v432_v20, %v431_v18  ;;  %v444_v24 = vrot.slane %v443_v21, 1 }
 0x15c   : > { %v434_v26 = vadd.f32 %v433_v23, %v426_v22  ;;  %v445_v27 = vadd.f32 %v444_v24, %v443_v21  ;;  %451 = sbr.rel (%p950_p9) target bundleno = 1374 (0x55e), region = 80 }
 0x15e   : > { %436 = vst.msk [vmem:[#allocation3] sm:$0x1] %vm435_vm3, %v434_v26  ;;  %v446_v28 = vadd.f32 %v445_v27, %v437_v25 }
 0x160   : > { %447 = vst.msk [vmem:[#allocation4] sm:$0x1] %vm435_vm3, %v446_v28 }
 0x161   : > { %v1121_v29 = vld [vmem:[#allocation10 + $0x8] sm:$0xff]   ;;  %v1380_v30 = vmov 0.0   ;;  %v1122_v31 = vld [vmem:[#allocation10] sm:$0xff]   ;;  %vm1381_vm4 = vmmov 0   ;;  %v464_v39 = vlaneseq  ;;  %v462_v45 = vld [vmem:[#allocation2 + $0x8] sm:$0xff]  ;;  %vm522_vm5 = vcmask 1041409  }
 0x162   : > { %984 = vmatprep.subr.bf16.mxu0 %v1380_v30  ;;  %992 = vmatprep.subr.bf16.mxu1 %v1380_v30  ;;  %v461_v44 = vld [vmem:[#allocation2] sm:$0xff]  ;;  %v1123_v20 = vld [vmem:[#allocation11 + $0x8] sm:$0xff]   ;;  %vm580_vm6 = vcmask 254976   ;;  %vm775_vm7 = vcmask 1041408  }
 0x163   : > { %985 = vmatpush3.bf16.msra.mxu0 %v1121_v29  ;;  %988 = vmatprep.mubr.msk.bf16.mxu0 %vm1381_vm4, %v1380_v30  ;;  %v1611_v41 = vshrl.u32 %v464_v39, 7  ;;  %v1620_v46 = vld [vmem:[%s1687_s5] sm:$0x3f] }
 0x164   : > { %986 = vmatprep.subr.bf16.mxu0 %v1380_v30  ;;  %996 = vmatprep.mubr.msk.bf16.mxu1 %vm1381_vm4, %v1380_v30  ;;  %v1124_v21 = vld [vmem:[#allocation11] sm:$0xff]  }
 0x165   : > { %v454_v32 = vld [vmem:[#allocation3] sm:$0x1]  ;;  %v1614_v42 = vsub.s32 0, %v1611_v41  ;;  %v489_v49 = vsub.s32 1, %v1611_v41  ;;  %993 = vmatpush3.bf16.msra.mxu1 %v1123_v20 }
 0x166   : > { %v455_v34 = vmul.f32 0.0625, %v454_v32  ;;  %994 = vmatprep.subr.bf16.mxu1 %v1380_v30 }
 0x167   : > { %v456_v33 = vld [vmem:[#allocation4] sm:$0x1]  ;;  %987 = vmatpush3.bf16.msra.mxu0 %v1122_v31  ;;  %v484_v52 = vrot.slane %v1620_v46, %v1614_v42  ;;  %v490_v55 = vrot.slane %v1620_v46, %v489_v49 }
 0x168   : > { %v457_v35 = vmul.f32 0.0625, %v456_v33  ;;  %v458_v36 = vmul.f32 %v455_v34, %v455_v34  ;;  %1000 = vmatprep.subr.bf16.mxu0 %v1380_v30  ;;  %v467_v43 = vrot.slane %v455_v34, %v1614_v42 }
 0x169   : > { %995 = vmatpush3.bf16.msra.mxu1 %v1124_v21 }
 0x16a   : > { %v459_v37 = vsub.f32 %v457_v35, %v458_v36  ;;  %v469_v47 = vsub.f32 %v461_v44, %v467_v43  ;;  %v470_v48 = vsub.f32 %v462_v45, %v467_v43 }
 0x16c   : > { %v460_v38 = vmax.f32 %v459_v37, 0.0 }
 0x16e   : > { %v471_v40 = vadd.f32 1e-05, %v460_v38 }
 0x170   : > { %1127 = vrsqrt.f32 %v471_v40 }
 0x17d   : > { %v1128_v50 = vpop.eup %1127 }
 0x17e   : > { %v477_v51 = vrot.slane %v1128_v50, %v1614_v42 }
 0x180   : > { %v479_v53 = vmul.f32 %v477_v51, %v469_v47  ;;  %v480_v54 = vmul.f32 %v477_v51, %v470_v48 }
 0x182   : > { %v485_v56 = vmul.f32 %v484_v52, %v479_v53  ;;  %v486_v57 = vmul.f32 %v484_v52, %v480_v54  ;;  %v607_v52 = vsub.s32 2, %v1611_v41  ;;  %v612_v53 = vsub.s32 3, %v1611_v41 }
 0x184   : > { %v491_v58 = vadd.f32 %v490_v55, %v485_v56  ;;  %v492_v59 = vadd.f32 %v490_v55, %v486_v57  ;;  %v608_v55 = vrot.slane %v1620_v46, %v607_v52 }
 0x186   : > { %v493_v60 = vmax.f32 %v491_v58, 0.0  ;;  %v494_v61 = vmax.f32 %v492_v59, 0.0  ;;  %v613_v58 = vrot.slane %v1620_v46, %v612_v53 }
 0x188   : > { %v495_v62 = vsel %vm379_vm2, %v493_v60, 0.0  ;;  %v502_v63 = vsel %vm379_vm2, %v494_v61, 0.0 }
 0x189   : > { %v496_v0 = vrot.slane %v495_v62, 4  ;;  %v503_v1 = vrot.slane %v502_v63, 4 }
 0x18b   : > { %v497_v2 = vadd.f32 %v496_v0, %v495_v62  ;;  %v504_v3 = vadd.f32 %v503_v1, %v502_v63  ;;  %v1125_v63 = vld [vmem:[#allocation13 + $0x8] sm:$0xff]   ;;  %v1126_v0 = vld [vmem:[#allocation13] sm:$0xff]  }
 0x18d   : > { %v498_v4 = vrot.slane %v497_v2, 2  ;;  %v505_v5 = vrot.slane %v504_v3, 2 }
 0x18f   : > { %v499_v6 = vadd.f32 %v498_v4, %v497_v2  ;;  %v506_v7 = vadd.f32 %v505_v5, %v504_v3 }
 0x191   : > { %v500_v8 = vrot.slane %v499_v6, 1  ;;  %v507_v9 = vrot.slane %v506_v7, 1 }
 0x193   : > { %v501_v10 = vadd.f32 %v500_v8, %v499_v6  ;;  %v508_v11 = vadd.f32 %v507_v9, %v506_v7 }
 0x195   : > { %v510_v12 = vmul.f32 0.125, %v501_v10  ;;  %v511_v13 = vmul.f32 0.125, %v508_v11 }
 0x197   : > { %v516_v14 = vpack.c.bf16 %v510_v12, %v510_v12  ;;  %v517_v15 = vpack.c.bf16 %v511_v13, %v511_v13 }
 0x199   : > { %v520_v16 = vunpack.c.l.b16 %v516_v14  ;;  %v521_v17 = vunpack.c.l.b16 %v517_v15 }
 0x19b   : > { %v523_v18 = vsel %vm522_vm5, %v521_v17, %v520_v16 }
 0x19c   : > { %v524_v19 = vpack.c.b16 %v523_v18, %v523_v18 }
 0x19e   : > { %989 = vmatmul.mubr.msk.bf16.vlgmr.msra.gmra.mxu0 %vm379_vm2, %v524_v19 }
 0x19f   : > { %1004 = vmatprep.mubr.msk.bf16.mxu0 %vm1381_vm4, %v1380_v30  ;;  %1001 = vmatpush3.bf16.msra.mxu0 %v1125_v63 }
 0x1a0   : > { %1002 = vmatprep.subr.bf16.mxu0 %v1380_v30 }
 0x1a3   : > { %1003 = vmatpush3.bf16.msra.mxu0 %v1126_v0 }
 0x25e   : > { %v574_v22 = vpop.f32.mrf.mxu0 }
 0x25f   : > { %v581_v23 = vsel %vm580_vm6, %v574_v22, 0.0  ;;  %v589_v24 = vmul.f32 %v574_v22, %v574_v22 }
 0x260   : > { %v582_v25 = vrot.slane %v581_v23, 4  ;;  %v990_v26 = vpop.f32.mrf.mxu0 }
 0x261   : > { %v590_v27 = vsel %vm580_vm6, %v589_v24, 0.0  ;;  %v707_v26 = vsub.s32 5, %v1611_v41 }
 0x262   : > { %v583_v28 = vadd.f32 %v582_v25, %v581_v23  ;;  %v591_v29 = vrot.slane %v590_v27, 4  ;;  %v577_v31 = vpop.f32.mrf.mxu0  ;;  %v702_v25 = vsub.s32 4, %v1611_v41 }
 0x264   : > { %v584_v32 = vrot.slane %v583_v28, 2  ;;  %v592_v33 = vadd.f32 %v591_v29, %v590_v27  ;;  %v991_v34 = vpop.f32.mrf.mxu0 }
 0x266   : > { %v585_v35 = vadd.f32 %v584_v32, %v583_v28  ;;  %v593_v36 = vrot.slane %v592_v33, 2  ;;  %v703_v28 = vrot.slane %v1620_v46, %v702_v25  ;;  %v708_v32 = vrot.slane %v1620_v46, %v707_v26 }
 0x268   : > { %v586_v37 = vrot.slane %v585_v35, 1  ;;  %v594_v38 = vadd.f32 %v593_v36, %v592_v33 }
 0x26a   : > { %v587_v39 = vadd.f32 %v586_v37, %v585_v35  ;;  %v595_v40 = vrot.slane %v594_v38, 1  ;;  %v453_v37 = vld [vmem:[#allocation14] sm:$0x7] }
 0x26c   : > { %v588_v43 = vmul.f32 0.5, %v587_v39  ;;  %v596_v44 = vadd.f32 %v595_v40, %v594_v38  ;;  %v719_v38 = vrot.slane %v453_v37, %v1614_v42 }
 0x26e   : > { %v597_v45 = vmul.f32 0.5, %v596_v44  ;;  %v598_v47 = vmul.f32 %v588_v43, %v588_v43  ;;  %v601_v54 = vsub.f32 %v574_v22, %v588_v43 }
 0x270   : > { %v599_v48 = vsub.f32 %v597_v45, %v598_v47 }
 0x272   : > { %v600_v50 = vmax.f32 %v599_v48, 0.0 }
 0x274   : > { %v602_v51 = vadd.f32 1e-05, %v600_v50 }
 0x276   : > { %1129 = vrsqrt.f32 %v602_v51 }
 0x283   : > { %v1130_v56 = vpop.eup %1129 }
 0x284   : > { %v604_v57 = vmul.f32 %v1130_v56, %v601_v54 }
 0x286   : > { %v609_v59 = vmul.f32 %v608_v55, %v604_v57 }
 0x288   : > { %v614_v60 = vadd.f32 %v613_v58, %v609_v59 }
 0x28a   : > { %v615_v61 = vmax.f32 %v614_v60, 0.0 }
 0x28c   : > { %v620_v62 = vpack.c.bf16 %v615_v61, %v615_v61 }
 0x28e   : > { %997 = vmatmul.mubr.msk.bf16.vlgmr.msra.gmra.mxu1 %vm379_vm2, %v620_v62 }
 0x34e   : > { %v670_v1 = vpop.f32.mrf.mxu1 }
 0x34f   : > { %v676_v2 = vsel %vm580_vm6, %v670_v1, 0.0  ;;  %v684_v3 = vmul.f32 %v670_v1, %v670_v1 }
 0x350   : > { %v677_v4 = vrot.slane %v676_v2, 4  ;;  %v998_v5 = vpop.f32.mrf.mxu1 }
 0x351   : > { %v685_v6 = vsel %vm580_vm6, %v684_v3, 0.0 }
 0x352   : > { %v678_v7 = vadd.f32 %v677_v4, %v676_v2  ;;  %v686_v8 = vrot.slane %v685_v6, 4  ;;  %v673_v9 = vpop.f32.mrf.mxu1  ;;  %v813_v4 = vrot.slane %v453_v37, %v489_v49 }
 0x354   : > { %v679_v10 = vrot.slane %v678_v7, 2  ;;  %v687_v11 = vadd.f32 %v686_v8, %v685_v6  ;;  %v999_v12 = vpop.f32.mrf.mxu1 }
 0x356   : > { %v680_v13 = vadd.f32 %v679_v10, %v678_v7  ;;  %v688_v14 = vrot.slane %v687_v11, 2  ;;  %v818_v7 = vrot.slane %v453_v37, %v607_v52 }
 0x358   : > { %v681_v15 = vrot.slane %v680_v13, 1  ;;  %v689_v16 = vadd.f32 %v688_v14, %v687_v11 }
 0x35a   : > { %v682_v30 = vadd.f32 %v681_v15, %v680_v13  ;;  %v690_v17 = vrot.slane %v689_v16, 1 }
 0x35c   : > { %v683_v18 = vmul.f32 0.5, %v682_v30  ;;  %v691_v19 = vadd.f32 %v690_v17, %v689_v16 }
 0x35e   : > { %v692_v20 = vmul.f32 0.5, %v691_v19  ;;  %v693_v21 = vmul.f32 %v683_v18, %v683_v18  ;;  %v696_v27 = vsub.f32 %v670_v1, %v683_v18 }
 0x360   : > { %v694_v22 = vsub.f32 %v692_v20, %v693_v21 }
 0x362   : > { %v695_v23 = vmax.f32 %v694_v22, 0.0 }
 0x364   : > { %v697_v24 = vadd.f32 1e-05, %v695_v23 }
 0x366   : > { %1131 = vrsqrt.f32 %v697_v24 }
 0x373   : > { %v1132_v29 = vpop.eup %1131 }
 0x374   : > { %v699_v31 = vmul.f32 %v1132_v29, %v696_v27 }
 0x376   : > { %v704_v33 = vmul.f32 %v703_v28, %v699_v31 }
 0x378   : > { %v709_v34 = vadd.f32 %v708_v32, %v704_v33 }
 0x37a   : > { %v710_v35 = vmax.f32 %v709_v34, 0.0 }
 0x37c   : > { %v715_v36 = vpack.c.bf16 %v710_v35, %v710_v35 }
 0x37e   : > { %1005 = vmatmul.mubr.msk.bf16.vlgmr.msra.gmra.mxu0 %vm379_vm2, %v715_v36 }
 0x43e   : > { %v769_v39 = vpop.f32.mrf.mxu0 }
 0x43f   : > { %v770_v40 = vadd.f32 %v769_v39, %v719_v38 }
 0x440   : > { %v1006_v43 = vpop.f32.mrf.mxu0 }
 0x441   : > { %v776_v44 = vsel %vm775_vm7, %v770_v40, 0.0  ;;  %v787_v45 = vmul.f32 %v770_v40, %v770_v40 }
 0x442   : > { %777 = vadd.xlane.f32.xlu0 %v776_v44  ;;  %v772_v47 = vpop.f32.mrf.mxu0 }
 0x443   : > { %v788_v50 = vsel %vm775_vm7, %v787_v45, 0.0 }
 0x444   : > { %v1007_v48 = vpop.f32.mrf.mxu0 }
 0x446   : > { %789 = vadd.xlane.f32.xlu0 %v788_v50 }
 0x4cb   : > { %v778_v46 = vpop.xlane.xlu0 %777 }
 0x4cc   : > { %v779_v51 = vrot.slane %v778_v46, 4 }
 0x4ce   : > { %v780_v53 = vadd.f32 %v779_v51, %v778_v46 }
 0x4cf   : > { %v790_v54 = vpop.xlane.xlu0 %789 }
 0x4d0   : > { %v781_v55 = vrot.slane %v780_v53, 2  ;;  %v791_v56 = vrot.slane %v790_v54, 4 }
 0x4d2   : > { %v792_v57 = vadd.f32 %v791_v56, %v790_v54  ;;  %v782_v58 = vadd.f32 %v781_v55, %v780_v53 }
 0x4d4   : > { %v793_v42 = vrot.slane %v792_v57, 2  ;;  %v783_v59 = vrot.slane %v782_v58, 1 }
 0x4d6   : > { %v794_v60 = vadd.f32 %v793_v42, %v792_v57  ;;  %v784_v61 = vadd.f32 %v783_v59, %v782_v58 }
 0x4d8   : > { %1008 = vpush %v784_v61  ;;  %v795_v62 = vrot.slane %v794_v60, 1 }
 0x4da   : > { %v796_v63 = vadd.f32 %v795_v62, %v794_v60 }
 0x4dc   : > { %1010 = vpush %v796_v63 }
 0x509   : > { %s1009_s13 = spop %1008 }
 0x50a   : > { %s786_s19 = smul.f32 0.03125, %s1009_s13 }
 0x50c   : > { %s799_s21 = smul.f32 %s786_s19, %s786_s19  ;;  %v802_v2 = vstv %s786_s19 }
 0x50d   : > { %s1011_s22 = spop %1010  ;;  %v803_v3 = vsub.f32 %v770_v40, %v802_v2 }
 0x50e   : > { %s798_s11 = smul.f32 0.03125, %s1011_s22 }
 0x510   : > { %s800_s16 = ssub.f32 %s798_s11, %s799_s21 }
 0x512   : > { %s801_s28 = smax.f32 %s1382_s29, %s800_s16 }
 0x513   : > { %s804_s9 = sadd.f32 0.001, %s801_s28 }
 0x515   : > { %v805_v0 = vstv %s804_s9 }
 0x516   : > { %1133 = vrsqrt.f32 %v805_v0 }
 0x523   : > { %v1134_v1 = vpop.eup %1133 }
 0x524   : > { %1012 = vpush %v1134_v1 }
 0x555   : > { %s1013_s10 = spop %1012 }
 0x556   : > { %v808_v5 = vstv %s1013_s10 }
 0x557   : > { %v809_v6 = vmul.f32 %v808_v5, %v803_v3 }
 0x559   : > { %v814_v8 = vmul.f32 %v813_v4, %v809_v6 }
 0x55b   : > { %v819_v9 = vadd.f32 %v818_v7, %v814_v8 }
 0x55d   : > { %820 = vst [vmem:[#allocation16] sm:$0x3] %v819_v9 }
 0x55e PF: > { %p1071_p10 = scmp.eq.s32.totalorder %s1445_s30, 1  ;;  %s1383_s12 = smov [#allocation16]  }
 0x55f   : > { %s828_s24 = sshll.u32 %s1383_s12, 4  ;;  %s829_s24 = int_to_ptr.vmem [resolvable:$true] %s828_s24 }
 0x560   : > { %s1293_s20 = scalar_lea.vmem %s829_s24, 32  ;;  %p1300_p7 = scmp.lt.s32.totalorder %s829_s24, %s829_s24 }
 0x561   : > { %p1294_p12 = scmp.ne.s32.totalorder %s829_s24, %s1293_s20  ;;  %p1301_p3 = scmp.lt.s32.totalorder %s1293_s20, %s1293_s20 }
 0x563   : > { %p1295_p0 = pnand %p1294_p12, %p1071_p10  ;;  %p1302_p1 = por %p1301_p3, %p1300_p7 }
 0x565   : > { %p1296_p2 = pneg %p1295_p0 }
 0x567   : > { %p1303_p4 = pnand %p1302_p1, %p1296_p2 }
 0x569   : > { %1306 = shalt.err (!%p1303_p4)
}
 0x56a   : > { %1037 = dma.vmem_to_hbm [thread:$0]  (%p1071_p10), %s829_s24, 32, %s1689_s7, [#allocation7]  }
 0x56b   : > { %1350 = dma.done.wait (%p1071_p10), [#allocation7], 32  }
 0x56c   : > { %1352 = vsyncadd (%p1071_p10), [#allocation7], 4294967264 }
 0x56d PF: > { %p21_p11 = scmp.ge.s32.totalorder %s1531_s14, 4   ;;  %s1707_s24 = smov %s1359_s25 }
 0x56e   : > { %s1708_s25 = smov %s1363_s26  ;;  %s1709_s26 = smov %s1542_s17 }
 0x56f   : > { %s1710_s27 = smov %s1531_s14  ;;  %23 = sbr.rel (!%p21_p11) target bundleno = 7 (0x7), region = 114 }
 0x574   :  { %841 = vsyncpa [#allocation6], 1 }
 0x575   :  { %843 = vsyncpa [#allocation6 + $0x1], 1 }
 0x576   :  { %844 = vsyncpa [#allocation9], 1 }
 0x577   :  { %845 = vsyncpa [#allocation12], 1 }
 0x578   :  { %846 = vsyncpa [#allocation15], 1 }
 0x579   :  { %847 = vsyncpa [#allocation7], 1 }
 0x57a   :  { %849 = vsyncpa [#allocation7 + $0x1], 1 }

</bundles_post_ra>
